<compile_context>
chip_gen: v7x
topology: tpu7x:2x2x1
jax: 0.10.0
libtpu: 0.0.40
codegen_flags: <defaults>
</compile_context>

<pallas_src>
import functools
from itertools import combinations

import numpy as np
import jax
import jax.numpy as jnp
from jax import lax
from jax.experimental import pallas as pl
from jax.experimental.pallas import tpu as pltpu


def _contrastive_kernel(scal_ref, x_ref, out_ref, *, K, L):
    """Single grid step.

    scal_ref: SMEM (2,) f32 = [margin, eps]
    x_ref:    VMEM (K*L, N) in the input's native dtype (rows of class k at
              [k*L, (k+1)*L); no padding)
    out_ref:  VMEM (1, 1) f32 scalar loss
    """
    margin = scal_ref[0]
    eps = scal_ref[1]

    x = x_ref[...].astype(jnp.float32)                      # (K*L, N)
    KL, N = x.shape

    # ---- streamed per-row squared norms (VPU + lane reduce, no xsq operand) --
    r = jnp.sum(x * x, axis=-1, keepdims=True)              # (KL, 1)

    # ---- per-class row sums via layout-free leading-dim split ----------------
    x3 = x.reshape(K, L, N)                                  # (K, L, N)
    s = jnp.sum(x3, axis=1)                                  # (K, N)

    total = jnp.zeros((1, 1), jnp.float32)

    # ---- intra-class term (skipped when L == 1, mirroring the torch code) ---
    if L != 1:  # static compile-time guard
        sum_q = jnp.sum(r, axis=0, keepdims=True)            # (1,1) = sum_k q_k
        sum_sn = jnp.sum(jnp.sum(s * s, axis=-1, keepdims=True),
                         axis=0, keepdims=True)              # (1,1) = sum_k ||S_k||^2
        total = total + (float(L) * sum_q - sum_sn) * (1.0 / 6.0)

    # ---- inter-class hinge term (skipped when K == 1) ------------------------
    if K > 1:  # static compile-time guard
        # crossT[j, k1] = x[j] . S_{k1}; big operand x is the natural LHS.
        crossT = lax.dot_general(x, s, (((1,), (1,)), ((), ())),
                                 preferred_element_type=jnp.float32)   # (KL, K)

        row_j = lax.broadcasted_iota(jnp.int32, (KL, K), 0)   # flat row index
        col_k = lax.broadcasted_iota(jnp.int32, (KL, K), 1)   # column class k1
        ge_lo = row_j >= col_k * L                            # class(row) >= k1
        ge_hi = row_j >= (col_k + 1) * L                      # class(row) >  k1  (pair mask)
        class_mask = ge_lo & (~ge_hi)                         # class(row) == k1

        # q_row[0, k1] = q_{k1}, laid out along lanes without relayouting r.
        q_row = jnp.sum(jnp.where(class_mask, r, 0.0),
                        axis=0, keepdims=True)                # (1, K)

        # d[j, k1] = (q_k1 + L*||x_j||^2 - 2 S_k1 . x_j) / (2L)
        d = (q_row + float(L) * r - 2.0 * crossT) * (1.0 / (2.0 * float(L)))
        d = jnp.maximum(d, 0.0)                               # f32 cancellation guard
        hinge = jnp.maximum(margin - (d + eps), 0.0)
        inter = jnp.where(ge_hi, 0.5 * hinge * hinge, 0.0)    # strict upper triangle
        total = total + jnp.sum(jnp.sum(inter, axis=-1, keepdims=True),
                                axis=0, keepdims=True)

    out_ref[...] = total


def contrastive_loss(x, margin, eps=1e-9):
    """x: [K, L, N] stacked f_dic values. Returns shape-(1,) float32 loss."""
    K, L, N = x.shape
    x2 = x.reshape(K * L, N)                        # metadata-only; no pad, no cast
    scal = jnp.array([margin, eps], dtype=jnp.float32)   # runtime scalars (no recompile)

    kernel = functools.partial(_contrastive_kernel, K=K, L=L)

    flops = 2 * K * K * L * N + 8 * K * L * N       # crossT matmul + elementwise
    bytes_accessed = (K * L * N * x2.dtype.itemsize) + 2 * 4 + 4

    out = pl.pallas_call(
        kernel,
        out_shape=jax.ShapeDtypeStruct((1, 1), jnp.float32),
        grid=(1,),
        in_specs=[
            pl.BlockSpec(memory_space=pltpu.MemorySpace.SMEM),   # [margin, eps]
            pl.BlockSpec((K * L, N), lambda i: (0, 0)),          # x fully resident
        ],
        out_specs=pl.BlockSpec((1, 1), lambda i: (0, 0)),
        compiler_params=pltpu.CompilerParams(
            dimension_semantics=("arbitrary",),
            vmem_limit_bytes=48 * 1024 * 1024,       # > 16/32 MiB defaults, < v7x 64 MiB
        ),
        cost_estimate=pl.CostEstimate(
            flops=flops, transcendentals=0, bytes_accessed=bytes_accessed),
    )(scal, x2)
    return out.reshape(1)  # matches torch.zeros(1) output shape


def contrastive_loss_ref(x, margin, eps=1e-9):
    """Pure-JAX mirror of the PyTorch forward, for validation."""
    K, L, N = x.shape
    out = jnp.zeros((1,), jnp.float32)
    for k in range(K):
        mat = x[k]
        if L != 1:
            d = jnp.sum((mat[None, :, :] - mat[:, None, :]) ** 2)
            out = out + 0.5 * d / 6.0
    if K > 1:
        for k1, k2 in combinations(range(K), 2):
            b1, b2 = L, L
            for bb in range(b2):
                d = jnp.sum((x[k1] - x[k2][bb][None, :]) ** 2) / (b1 + b2)
                out = out + 0.5 * jnp.maximum(margin - (d + eps), 0.0) ** 2
    return out


if __name__ == "__main__":
    key = jax.random.PRNGKey(0)
    K, L, N = 3, 4, 32          # 3 keys in f_dic, 4 embeddings each, feature dim N=32
    B = L                       # B is accepted by forward() but never used
    margin = 1.0

    # small scale so the hinge term (margin - d) is active for some pairs
    x = 0.1 * jax.random.normal(key, (K, L, N), dtype=jnp.float32)

    out = contrastive_loss(x, margin)
    out = jax.block_until_ready(out)

    ref = contrastive_loss_ref(x, margin)
    np.testing.assert_allclose(np.asarray(out), np.asarray(ref), rtol=1e-3, atol=1e-5)

    print("KERNEL_OK")
</pallas_src>

<mosaic_0001>
module attributes {stable_mosaic.version = 11 : i64} {
  func.func @_contrastive_kernel(%arg0: i32, %arg1: memref<2xf32, #tpu.memory_space<smem>>, %arg2: memref<12x32xf32, #tpu.memory_space<vmem>>, %arg3: memref<1x1xf32, #tpu.memory_space<vmem>>) attributes {dimension_semantics = [#tpu.dimension_semantics<arbitrary>], iteration_bounds = array<i64: 1>, scalar_prefetch = 0 : i64, scratch_operands = 0 : i64, tpu.core_type = #tpu.core_type<tc>, window_params = [{transform_indices = @transform_0, window_bounds = array<i64: 2>}, {pipeline_mode = #tpu.pipeline_mode<synchronous>, transform_indices = @transform_1, window_bounds = array<i64: 12, 32>}, {pipeline_mode = #tpu.pipeline_mode<synchronous>, transform_indices = @transform_2, window_bounds = array<i64: 1, 1>}]} {
    %c0 = arith.constant 0 : index
    %0 = memref.load %arg1[%c0] : memref<2xf32, #tpu.memory_space<smem>>
    %c1 = arith.constant 1 : index
    %1 = memref.load %arg1[%c1] : memref<2xf32, #tpu.memory_space<smem>>
    %c0_0 = arith.constant 0 : index
    %c0_1 = arith.constant 0 : index
    %2 = vector.load %arg2[%c0_0, %c0_1] : memref<12x32xf32, #tpu.memory_space<vmem>>, vector<12x32xf32>
    %3 = arith.mulf %2, %2 : vector<12x32xf32>
    %cst = arith.constant dense<0.000000e+00> : vector<12xf32>
    %4 = vector.multi_reduction <add>, %3, %cst [1] : vector<12x32xf32> to vector<12xf32>
    %5 = vector.shape_cast %4 : vector<12xf32> to vector<12x1xf32>
    %6 = vector.shape_cast %2 : vector<12x32xf32> to vector<3x4x32xf32>
    %cst_2 = arith.constant dense<0.000000e+00> : vector<3x32xf32>
    %7 = vector.multi_reduction <add>, %6, %cst_2 [1] : vector<3x4x32xf32> to vector<3x32xf32>
    %cst_3 = arith.constant 0.000000e+00 : f32
    %8 = vector.broadcast %cst_3 : f32 to vector<1x1xf32>
    %cst_4 = arith.constant dense<0.000000e+00> : vector<1xf32>
    %9 = vector.multi_reduction <add>, %5, %cst_4 [0] : vector<12x1xf32> to vector<1xf32>
    %10 = vector.shape_cast %9 : vector<1xf32> to vector<1x1xf32>
    %11 = arith.mulf %7, %7 : vector<3x32xf32>
    %cst_5 = arith.constant dense<0.000000e+00> : vector<3xf32>
    %12 = vector.multi_reduction <add>, %11, %cst_5 [1] : vector<3x32xf32> to vector<3xf32>
    %13 = vector.shape_cast %12 : vector<3xf32> to vector<3x1xf32>
    %cst_6 = arith.constant dense<0.000000e+00> : vector<1xf32>
    %14 = vector.multi_reduction <add>, %13, %cst_6 [0] : vector<3x1xf32> to vector<1xf32>
    %15 = vector.shape_cast %14 : vector<1xf32> to vector<1x1xf32>
    %cst_7 = arith.constant 4.000000e+00 : f32
    %16 = vector.broadcast %cst_7 : f32 to vector<1x1xf32>
    %17 = arith.mulf %16, %10 : vector<1x1xf32>
    %18 = arith.subf %17, %15 : vector<1x1xf32>
    %cst_8 = arith.constant 0.166666672 : f32
    %19 = vector.broadcast %cst_8 : f32 to vector<1x1xf32>
    %20 = arith.mulf %18, %19 : vector<1x1xf32>
    %21 = arith.addf %8, %20 : vector<1x1xf32>
    %cst_9 = arith.constant dense<0.000000e+00> : vector<12x3xf32>
    %22 = tpu.matmul %2, %7, %cst_9 {dimension_numbers = #tpu.dot_dimension_numbers<[1], [1], [0], [0], [0, 0, 1, 0], [], []>} : vector<12x32xf32>, vector<3x32xf32>, vector<12x3xf32> -> vector<12x3xf32>
    %23 = tpu.iota {dimensions = array<i32: 0>} : vector<12x3xi32>
    %24 = tpu.iota {dimensions = array<i32: 1>} : vector<12x3xi32>
    %c4_i32 = arith.constant 4 : i32
    %25 = vector.broadcast %c4_i32 : i32 to vector<12x3xi32>
    %26 = arith.muli %24, %25 : vector<12x3xi32>
    %27 = arith.cmpi sge, %23, %26 : vector<12x3xi32>
    %c1_i32 = arith.constant 1 : i32
    %28 = vector.broadcast %c1_i32 : i32 to vector<12x3xi32>
    %29 = arith.addi %24, %28 : vector<12x3xi32>
    %c4_i32_10 = arith.constant 4 : i32
    %30 = vector.broadcast %c4_i32_10 : i32 to vector<12x3xi32>
    %31 = arith.muli %29, %30 : vector<12x3xi32>
    %32 = arith.cmpi sge, %23, %31 : vector<12x3xi32>
    %cst_11 = arith.constant dense<true> : vector<12x3xi1>
    %33 = arith.xori %32, %cst_11 : vector<12x3xi1>
    %34 = arith.andi %27, %33 : vector<12x3xi1>
    %cst_12 = arith.constant 0.000000e+00 : f32
    %35 = vector.shape_cast %5 : vector<12x1xf32> to vector<12x1xf32>
    %36 = vector.broadcast %35 : vector<12x1xf32> to vector<12x3xf32>
    %37 = vector.broadcast %cst_12 : f32 to vector<12x3xf32>
    %38 = arith.select %34, %36, %37 : vector<12x3xi1>, vector<12x3xf32>
    %cst_13 = arith.constant dense<0.000000e+00> : vector<3xf32>
    %39 = vector.multi_reduction <add>, %38, %cst_13 [0] : vector<12x3xf32> to vector<3xf32>
    %40 = vector.shape_cast %39 : vector<3xf32> to vector<1x3xf32>
    %cst_14 = arith.constant 4.000000e+00 : f32
    %41 = vector.broadcast %cst_14 : f32 to vector<12x1xf32>
    %42 = arith.mulf %41, %5 : vector<12x1xf32>
    %43 = vector.broadcast %40 : vector<1x3xf32> to vector<12x3xf32>
    %44 = vector.broadcast %42 : vector<12x1xf32> to vector<12x3xf32>
    %45 = arith.addf %43, %44 : vector<12x3xf32>
    %cst_15 = arith.constant 2.000000e+00 : f32
    %46 = vector.broadcast %cst_15 : f32 to vector<12x3xf32>
    %47 = arith.mulf %46, %22 : vector<12x3xf32>
    %48 = arith.subf %45, %47 : vector<12x3xf32>
    %cst_16 = arith.constant 1.250000e-01 : f32
    %49 = vector.broadcast %cst_16 : f32 to vector<12x3xf32>
    %50 = arith.mulf %48, %49 : vector<12x3xf32>
    %cst_17 = arith.constant 0.000000e+00 : f32
    %51 = vector.broadcast %cst_17 : f32 to vector<12x3xf32>
    %52 = arith.maximumf %50, %51 : vector<12x3xf32>
    %53 = vector.broadcast %1 : f32 to vector<12x3xf32>
    %54 = arith.addf %52, %53 : vector<12x3xf32>
    %55 = vector.broadcast %0 : f32 to vector<12x3xf32>
    %56 = arith.subf %55, %54 : vector<12x3xf32>
    %cst_18 = arith.constant 0.000000e+00 : f32
    %57 = vector.broadcast %cst_18 : f32 to vector<12x3xf32>
    %58 = arith.maximumf %56, %57 : vector<12x3xf32>
    %cst_19 = arith.constant 5.000000e-01 : f32
    %59 = vector.broadcast %cst_19 : f32 to vector<12x3xf32>
    %60 = arith.mulf %59, %58 : vector<12x3xf32>
    %61 = arith.mulf %60, %58 : vector<12x3xf32>
    %cst_20 = arith.constant 0.000000e+00 : f32
    %62 = vector.broadcast %cst_20 : f32 to vector<12x3xf32>
    %63 = arith.select %32, %61, %62 : vector<12x3xi1>, vector<12x3xf32>
    %cst_21 = arith.constant dense<0.000000e+00> : vector<12xf32>
    %64 = vector.multi_reduction <add>, %63, %cst_21 [1] : vector<12x3xf32> to vector<12xf32>
    %65 = vector.shape_cast %64 : vector<12xf32> to vector<12x1xf32>
    %cst_22 = arith.constant dense<0.000000e+00> : vector<1xf32>
    %66 = vector.multi_reduction <add>, %65, %cst_22 [0] : vector<12x1xf32> to vector<1xf32>
    %67 = vector.shape_cast %66 : vector<1xf32> to vector<1x1xf32>
    %68 = arith.addf %21, %67 : vector<1x1xf32>
    %c0_23 = arith.constant 0 : index
    %c0_24 = arith.constant 0 : index
    %69 = vector.load %arg3[%c0_23, %c0_24] : memref<1x1xf32, #tpu.memory_space<vmem>>, vector<1x1xf32>
    tpu.vector_store %arg3[%c0_23, %c0_24], %68 {strides = array<i32>} : memref<1x1xf32, #tpu.memory_space<vmem>>, vector<1x1xf32>,
    return
  }
  func.func @transform_0(%arg0: i32) -> i32 {
    %c0_i32 = arith.constant 0 : i32
    %c0_i32_0 = arith.constant 0 : i32
    return %c0_i32 : i32
  }
  func.func @transform_1(%arg0: i32) -> (i32, i32) {
    %c0_i32 = arith.constant 0 : i32
    %c0_i32_0 = arith.constant 0 : i32
    %c0_i32_1 = arith.constant 0 : i32
    return %c0_i32, %c0_i32_0 : i32, i32
  }
  func.func @transform_2(%arg0: i32) -> (i32, i32) {
    %c0_i32 = arith.constant 0 : i32
    %c0_i32_0 = arith.constant 0 : i32
    %c0_i32_1 = arith.constant 0 : i32
    return %c0_i32, %c0_i32_0 : i32, i32
  }
}

</mosaic_0001>

<bundles_post_ra>
// kernel: tpu_custom_call.1
= control target key start
LH: loop header
LB: loop body
LE: loop exit
PB: predicated region body
PF: predicated region fallthrough
CT: control target
= control target key end

     0   :  { %7 = vsyncpa [#allocation5], 0  ;;  %s453_s0 = inlined_call_operand.hbm [shape: f32[2], index: 0, kind: input, shape index: {}]   ;;  %s454_s1 = inlined_call_operand.hbm [shape: f32[12,32], index: 1, kind: input, shape index: {}]   ;;  %s455_s2 = inlined_call_operand.hbm [shape: f32[1,1], index: 2, kind: output, shape index: {}]  }
   0x1   :  { %8 = vsyncpa [#allocation3], 0 }
   0x2   :  { %9 = vsyncpa [#allocation4], 0  ;;  %s305_s11 = scalar_lea.hbm %s453_s0, 16 }
   0x3   :  { %p306_p0 = scmp.ne.s32.totalorder %s453_s0, %s305_s11  ;;  %p309_p1 = scmp.lt.u32.totalorder %s305_s11, %s453_s0 }
   0x5   :  { %p311_p2 = pnand %p309_p1, %p306_p0 }
   0x7   :  { %314 = shalt.err (!%p311_p2)
}
   0x8   :  { %s365_s16 = smov [#allocation2]   ;;  %s366_s19 = smov [#allocation6]  }
   0x9   :  { %17 = dma.hbm_to_smem %s453_s0, 16, %s365_s16, [#allocation5]  }
   0xa   :  { %s23_s20 = sshll.u32 %s366_s19, 4  ;;  %s315_s23 = scalar_lea.hbm %s454_s1, 256  ;;  %s24_s20 = int_to_ptr.vmem [resolvable:$true] %s23_s20 }
   0xb   :  { %p316_p3 = scmp.ne.s32.totalorder %s454_s1, %s315_s23  ;;  %p319_p4 = scmp.lt.u32.totalorder %s315_s23, %s454_s1 }
   0xd   :  { %p321_p5 = pnand %p319_p4, %p316_p3 }
   0xf   :  { %324 = shalt.err (!%p321_p5)
}
  0x10   :  { %s325_s28 = scalar_lea.vmem %s24_s20, 256  ;;  %p330_p7 = scmp.lt.s32.totalorder %s24_s20, %s24_s20 }
  0x11   :  { %p326_p6 = scmp.ne.s32.totalorder %s24_s20, %s325_s28  ;;  %p331_p8 = scmp.lt.s32.totalorder %s325_s28, %s325_s28 }
  0x13   :  { %p332_p9 = por %p331_p8, %p330_p7 }
  0x15   :  { %p333_p10 = pnand %p332_p9, %p326_p6 }
  0x17   :  { %336 = shalt.err (!%p333_p10)
}
  0x18   :  { %s367_s0 = smov 128   ;;  %s368_s29 = smov 8  }
  0x19   :  { %29 = dma.hbm_to_vmem [thread:$0]  %s454_s1, 256, %s24_s20, [#allocation3], %s367_s0, %s367_s0, %s368_s29  }
  0x1a   :  { %359 = dma.done.wait [#allocation5], 16  }
  0x1b   :  { %360 = vsyncadd [#allocation5], 4294967280 }
  0x1c   :  { %361 = dma.done.wait [#allocation3], 256  }
  0x1d   :  { %362 = vsyncadd [#allocation3], 4294967040 }
  0x1e   :  { %36 = sfence }
  0x1f   :  { %v39_v0 = vld [vmem:[#allocation6] sm:$0xff]  ;;  %v40_v1 = vld [vmem:[#allocation6 + $0x8] sm:$0xf]  ;;  %vm43_vm0 = vcmask 261120   ;;  %vm47_vm1 = vcmask 257024   ;;  %vm91_vm2 = vcmask 1041409   ;;  %v198_v36 = vlaneseq }
  0x20   :  { %v53_v2 = vcombine.high %v39_v0, %v39_v0  ;;  %v55_v3 = vsel %vm47_vm1, %v39_v0, 0.0  ;;  %v69_v4 = vsel %vm47_vm1, %v40_v1, 0.0  ;;  %295 = vmatprep.mubr.msk.f32.mxu0 %vm43_vm0, %v39_v0  ;;  %v41_v7 = vmul.f32 %v39_v0, %v39_v0  ;;  %s286_s1 = sld [smem:[#allocation2 + $0x1]]  ;;  %s37_s4 = sld [smem:[#allocation2]] }
  0x21   :  { %v56_v5 = vrot.slane %v55_v3, 4  ;;  %v70_v6 = vrot.slane %v69_v4, 4  ;;  %v42_v8 = vmul.f32 %v40_v1, %v40_v1  ;;  %vm93_vm3 = vcmask 1042434   ;;  %s370_s5 = smov [#allocation7]  }
  0x22   :  { %v62_v9 = vsel %vm47_vm1, %v53_v2, 0.0  ;;  %v44_v13 = vsel %vm43_vm0, %v41_v7, 0.0  ;;  %vm96_vm4 = vcmask 256000   ;;  %v202_v37 = vand.u32 127, %v198_v36  ;;  %s276_s6 = sshll.u32 %s370_s5, 4  ;;  %s277_s6 = int_to_ptr.vmem [resolvable:$true] %s276_s6 }
  0x23   :  { %v57_v10 = vadd.f32 %v56_v5, %v55_v3  ;;  %v63_v11 = vrot.slane %v62_v9, 4  ;;  %v71_v12 = vadd.f32 %v70_v6, %v69_v4  ;;  %45 = vadd.xlane.f32.xlu0 %v44_v13  ;;  %v48_v17 = vsel %vm47_vm1, %v42_v8, 0.0  ;;  %s337_s7 = scalar_lea.vmem %s277_s6, 16  ;;  %s341_s8 = scalar_lea.vmem %s277_s6, 32 }
  0x24   :  { %v206_v38 = vadd.s32 1, %v202_v37  ;;  %v199_v39 = vshrl.u32 %v198_v36, 7  ;;  %v203_v42 = vmul.u32 4, %v202_v37  ;;  %vm369_vm8 = vmmov 1   ;;  %p338_p11 = scmp.ne.s32.totalorder %s277_s6, %s337_s7  ;;  %p342_p12 = scmp.lt.s32.totalorder %s277_s6, %s277_s6 }
  0x25   :  { %v58_v14 = vrot.slane %v57_v10, 2  ;;  %v64_v15 = vadd.f32 %v63_v11, %v62_v9  ;;  %v72_v16 = vrot.slane %v71_v12, 2  ;;  %vm216_vm14 = vcmask 23552   ;;  %p343_p13 = scmp.lt.s32.totalorder %s341_s8, %s337_s7 }
  0x26   :  { %v207_v40 = vmul.u32 4, %v206_v38  ;;  %v200_v41 = vadd.s32 8, %v199_v39  ;;  %vm204_vm7 = vcmp.ge.s32.totalorder %v199_v39, %v203_v42  ;;  %vm218_vm15 = vcmask 19456  }
  0x27   :  { %v59_v18 = vadd.f32 %v58_v14, %v57_v10  ;;  %v65_v19 = vrot.slane %v64_v15, 2  ;;  %v73_v20 = vadd.f32 %v72_v16, %v71_v12  ;;  %49 = vadd.xlane.f32.xlu0 %v48_v17  ;;  %v239_v5 = vstv %s286_s1  ;;  %p344_p0 = por %p343_p13, %p342_p12 }
  0x28   :  { %vm419_vm5 = vcmp.ge.s32.totalorder %v199_v39, %v207_v40  ;;  %vm423_vm6 = vcmp.ge.s32.totalorder %v200_v41, %v207_v40  ;;  %vm205_vm10 = vcmp.ge.s32.totalorder %v200_v41, %v203_v42  ;;  %v242_v8 = vstv %s37_s4 }
  0x29   :  { %v60_v21 = vrot.slane %v59_v18, 1  ;;  %v66_v22 = vadd.f32 %v65_v19, %v64_v15  ;;  %v74_v23 = vrot.slane %v73_v20, 1  ;;  %vm210_vm9 = vmxor %vm419_vm5, %vm369_vm8  ;;  %vm100_vm1 = vcmask 1042432   ;;  %p345_p1 = pnand %p344_p0, %p338_p11 }
  0x2a   :  { %vm211_vm11 = vmxor %vm423_vm6, %vm369_vm8 }
  0x2b   :  { %v61_v24 = vadd.f32 %v60_v21, %v59_v18  ;;  %v67_v25 = vrot.slane %v66_v22, 1  ;;  %v75_v26 = vadd.f32 %v74_v23, %v73_v20  ;;  %vm212_vm12 = vmand %vm204_vm7, %vm210_vm9 }
  0x2c   :  { %vm213_vm13 = vmand %vm205_vm10, %vm211_vm11 }
  0x2d   :  { %v68_v27 = vadd.f32 %v67_v25, %v66_v22  ;;  %v85_v28 = vmul.f32 %v61_v24, %v61_v24  ;;  %v87_v29 = vmul.f32 %v75_v26, %v75_v26 }
  0x2f   :  { %v115_v30 = vsel %vm91_vm2, %v68_v27, %v61_v24  ;;  %v86_v31 = vmul.f32 %v68_v27, %v68_v27 }
  0x30   :  { %v116_v32 = vsel %vm93_vm3, %v75_v26, %v115_v30 }
  0x31   :  { %293 = vmatprep.subr.msk.mxu0 %vm43_vm0, %v116_v32  ;;  %v92_v33 = vsel %vm91_vm2, %v86_v31, %v85_v28  ;;  %vm268_vm2 = vcmask 0  }
  0x32   :  { %294 = vmatpush3.xpose.msk.msra.mxu0 %vm43_vm0, %v116_v32  ;;  %v94_v34 = vsel %vm93_vm3, %v87_v29, %v92_v33 }
  0x33   :  { %v97_v35 = vsel %vm96_vm4, %v94_v34, 0.0 }
  0x34   :  { %98 = vadd.xlane.f32.xlu1 %v97_v35 }
  0x35   :  { %296 = vmatmul.mubr.msk.f32.vlgmr.msra.gmra.mrb[0].mxu0 %vm43_vm0, %v40_v1  ;;  %vm76_vm0 = vcmask 1043456  }
  0xb0   :  { %v46_v44 = vpop.xlane.xlu0 %45 }
  0xb1   :  { %v214_v47 = vsel %vm212_vm12, %v46_v44, 0.0  ;;  %v227_v58 = vmul.f32 4.0, %v46_v44 }
  0xb2   :  { %v217_v49 = vsel %vm216_vm14, %v214_v47, 0.0 }
  0xb4   :  { %v50_v46 = vpop.xlane.xlu0 %49 }
  0xb5   :  { %v215_v48 = vsel %vm213_vm13, %v50_v46, 0.0  ;;  %v228_v57 = vmul.f32 4.0, %v50_v46  ;;  %v77_v24 = vsel %vm76_vm0, %v50_v46, 0.0 }
  0xb6   :  { %v219_v50 = vsel %vm218_vm15, %v215_v48, 0.0  ;;  %v78_v25 = vadd.f32 %v77_v24, %v46_v44 }
  0xb7   :  { %v220_v51 = vadd.f32 %v219_v50, %v217_v49 }
  0xb8   :  { %v79_v27 = vrot.slane %v78_v25, 4 }
  0xb9   :  { %v221_v52 = vrot.slane %v220_v51, 4 }
  0xba   :  { %v80_v30 = vadd.f32 %v79_v27, %v78_v25 }
  0xbb   :  { %v222_v53 = vadd.f32 %v221_v52, %v220_v51 }
  0xbc   :  { %v81_v32 = vrot.slane %v80_v30, 2 }
  0xbd   :  { %v223_v54 = vrot.slane %v222_v53, 2 }
  0xbe   :  { %v82_v34 = vadd.f32 %v81_v32, %v80_v30 }
  0xbf   :  { %v224_v55 = vadd.f32 %v223_v54, %v222_v53 }
  0xc0   :  { %v83_v36 = vrot.slane %v82_v34, 1 }
  0xc1   :  { %v225_v56 = vrot.slane %v224_v55, 1  ;;  %v99_v26 = vpop.xlane.xlu1 %98 }
  0xc2   :  { %v101_v28 = vsel %vm100_vm1, %v99_v26, 0.0  ;;  %v84_v42 = vadd.f32 %v83_v36, %v82_v34 }
  0xc3   :  { %v226_v59 = vadd.f32 %v225_v56, %v224_v55  ;;  %v102_v29 = vrot.slane %v101_v28, 4 }
  0xc4   :  { %v108_v46 = vmul.f32 4.0, %v84_v42 }
  0xc5   :  { %v230_v63 = vadd.f32 %v228_v57, %v226_v59  ;;  %v229_v1 = vadd.f32 %v227_v58, %v226_v59  ;;  %v103_v31 = vadd.f32 %v102_v29, %v101_v28 }
  0xc7   :  { %v104_v33 = vrot.slane %v103_v31, 2 }
  0xc9   :  { %v105_v35 = vadd.f32 %v104_v33, %v103_v31 }
  0xcb   :  { %v106_v40 = vrot.slane %v105_v35, 1 }
  0xcd   :  { %v107_v44 = vadd.f32 %v106_v40, %v105_v35 }
  0xcf   :  { %v109_v49 = vsub.f32 %v108_v46, %v107_v44 }
  0xd1   :  { %v110_v51 = vmul.f32 0.16666667, %v109_v49 }
 0x108   :  { %v297_v60 = vpop.f32.mrb[0].mxu0 }
 0x109   :  { %v232_v61 = vmul.f32 2.0, %v297_v60  ;;  %v189_v62 = vpop.f32.mrb[1].mxu0 }
 0x10a   :  { %v231_v0 = vmul.f32 2.0, %v189_v62 }
 0x10b   :  { %v234_v2 = vsub.f32 %v230_v63, %v232_v61 }
 0x10c   :  { %v233_v3 = vsub.f32 %v229_v1, %v231_v0 }
 0x10d   :  { %v236_v4 = vmul.f32 0.125, %v234_v2 }
 0x10e   :  { %v235_v6 = vmul.f32 0.125, %v233_v3 }
 0x10f   :  { %v238_v7 = vmax.f32 %v236_v4, 0.0 }
 0x110   :  { %v237_v9 = vmax.f32 %v235_v6, 0.0 }
 0x111   :  { %v241_v10 = vadd.f32 %v239_v5, %v238_v7 }
 0x112   :  { %v240_v11 = vadd.f32 %v239_v5, %v237_v9 }
 0x113   :  { %v244_v12 = vsub.f32 %v242_v8, %v241_v10 }
 0x114   :  { %v243_v13 = vsub.f32 %v242_v8, %v240_v11 }
 0x115   :  { %v246_v14 = vmax.f32 %v244_v12, 0.0 }
 0x116   :  { %v245_v15 = vmax.f32 %v243_v13, 0.0 }
 0x117   :  { %v248_v16 = vmul.f32 0.5, %v246_v14 }
 0x118   :  { %v247_v17 = vmul.f32 0.5, %v245_v15 }
 0x119   :  { %v250_v18 = vmul.f32 %v248_v16, %v246_v14 }
 0x11a   :  { %v249_v19 = vmul.f32 %v247_v17, %v245_v15 }
 0x11b   :  { %v252_v20 = vsel %vm423_vm6, %v250_v18, 0.0 }
 0x11c   :  { %v256_v21 = vsel %vm218_vm15, %v252_v20, 0.0  ;;  %v251_v22 = vsel %vm419_vm5, %v249_v19, 0.0 }
 0x11d   :  { %257 = vadd.xlane.f32.xlu1 %v256_v21  ;;  %v253_v23 = vsel %vm216_vm14, %v251_v22, 0.0 }
 0x11e   :  { %254 = vadd.xlane.f32.xlu0 %v253_v23 }
 0x1aa   :  { %v258_v37 = vpop.xlane.xlu1 %257 }
 0x1ab   :  { %v259_v38 = vsel %vm76_vm0, %v258_v37, 0.0  ;;  %v255_v39 = vpop.xlane.xlu0 %254 }
 0x1ac   :  { %v260_v41 = vadd.f32 %v259_v38, %v255_v39 }
 0x1ae   :  { %v261_v43 = vrot.slane %v260_v41, 4 }
 0x1b0   :  { %v262_v45 = vadd.f32 %v261_v43, %v260_v41 }
 0x1b2   :  { %v263_v47 = vrot.slane %v262_v45, 2 }
 0x1b4   :  { %v264_v48 = vadd.f32 %v263_v47, %v262_v45 }
 0x1b6   :  { %v265_v50 = vrot.slane %v264_v48, 1 }
 0x1b8   :  { %v266_v52 = vadd.f32 %v265_v50, %v264_v48 }
 0x1ba   :  { %v267_v53 = vadd.f32 %v266_v52, %v110_v51 }
 0x1bc   :  { %269 = vst.msk [vmem:[#allocation7] sm:$0x1] %vm268_vm2, %v267_v53 }
 0x1bd   :  { %348 = shalt.err (!%p345_p1)
}
 0x1be   :  { %s349_s11 = scalar_lea.hbm %s455_s2, 16 }
 0x1bf   :  { %p350_p2 = scmp.ne.s32.totalorder %s455_s2, %s349_s11  ;;  %p353_p3 = scmp.lt.u32.totalorder %s349_s11, %s455_s2 }
 0x1c1   :  { %p355_p4 = pnand %p353_p3, %p350_p2 }
 0x1c3   :  { %358 = shalt.err (!%p355_p4)
}
 0x1c4   :  { %279 = dma.vmem_to_hbm [thread:$0]  %s277_s6, 16, %s455_s2, [#allocation4]  }
 0x1c5   :  { %363 = dma.done.wait [#allocation4], 16  }
 0x1c6   :  { %364 = vsyncadd [#allocation4], 4294967280 }
 0x1c7   :  { %283 = vsyncpa [#allocation3], 1 }
 0x1c8   :  { %284 = vsyncpa [#allocation4], 1 }
 0x1c9   :  { %285 = vsyncpa [#allocation5], 1 }

</bundles_post_ra>
